<compile_context>
chip_gen: v5e
topology: v5e:2x2
jax: 0.10.0
libtpu: 0.0.40
codegen_flags: <defaults>
</compile_context>

<pallas_src>
import numpy as np
import jax
import jax.numpy as jnp
from jax import lax
from jax.experimental import pallas as pl
from jax.experimental.pallas import tpu as pltpu

K = 5    # conv kernel size, padding = K // 2 = 2 (replicate)
CH = 16  # channels after every conv layer


def _full_spec(arr):
    nd = arr.ndim
    return pl.BlockSpec(arr.shape, lambda i, _nd=nd: (0,) * _nd)


def make_kernel(Bb, Rs, T, Cin_p):
    """Kernel closure.  Bb samples per grid step, Rs rows per sample, T raw steps/row."""
    T2, T4 = T // 2, T // 4   # L/2-domain and L/4-domain steps per row

    def kernel(pos_ref, x_ref,
               w1_ref, b1_ref, m1_ref, a1_ref,
               w2_ref, b2_ref, m2_ref, a2_ref,
               w3_ref, b3_ref, m3_ref, a3_ref,
               wr_ref, bl_ref, out_ref, *scr):
        pos = pos_ref[...]                     # (R, 1) int32: row index within its sample
        is_first = pos == 0
        is_last = pos == (Rs - 1)

        def shift_down(a):                     # result[r] = a[r-1]  (row 0 is masked out)
            return jnp.concatenate([a[:1], a[:-1]], axis=0)

        def shift_up(a):                       # result[r] = a[r+1]  (last row masked out)
            return jnp.concatenate([a[1:], a[-1:]], axis=0)

        def with_halo(cur, first0, first1, lastm1, last0):
            # Append halo lane groups for sample steps (base-2, base-1, base+n, base+n+1),
            # taken from neighbouring rows and clamped (replicate pad) at sample edges.
            gm2 = jnp.where(is_first, first0, shift_down(lastm1))
            gm1 = jnp.where(is_first, first0, shift_down(last0))
            gp1 = jnp.where(is_last, last0, shift_up(first0))
            gp2 = jnp.where(is_last, last0, shift_up(first1))
            return jnp.concatenate([cur, gm2, gm1, gp1, gp2], axis=-1)

        def conv_relu_bn(ext, w_ref, b_ref, m_ref, a_ref):
            y = jnp.dot(ext, w_ref[...], preferred_element_type=jnp.float32)
            y = jnp.maximum(y + b_ref[...], 0.0)        # bias + ReLU (lane dense)
            return y * m_ref[...] + a_ref[...]          # folded BatchNorm (eval mode)

        def pool2(y):
            # MaxPool1d(2): pooled step u ends up at lane 32*u + c; odd slots are
            # don't-care (the next banded weight matrix has zero rows there).
            return jnp.maximum(y[:, :-CH], y[:, CH:])

        # ---- conv1: (R, T*Cin_p) -> (R, T*16) ----------------------------------------
        x = x_ref[...]
        c = Cin_p
        ext = with_halo(x, x[:, 0:c], x[:, c:2 * c],
                        x[:, (T - 2) * c:(T - 1) * c], x[:, (T - 1) * c:T * c])
        y = conv_relu_bn(ext, w1_ref, b1_ref, m1_ref, a1_ref)

        # ---- pool1 + conv2: -> (R, T2*16) --------------------------------------------
        p = pool2(y)                                    # (R, (T-1)*16)
        ext = with_halo(p, p[:, 0:CH], p[:, 2 * CH:3 * CH],
                        p[:, (T - 4) * CH:(T - 3) * CH],
                        p[:, (T - 2) * CH:(T - 1) * CH])
        y = conv_relu_bn(ext, w2_ref, b2_ref, m2_ref, a2_ref)

        # ---- pool2 + conv3: -> (R, T4*16) --------------------------------------------
        p = pool2(y)                                    # (R, (T2-1)*16)
        ext = with_halo(p, p[:, 0:CH], p[:, 2 * CH:3 * CH],
                        p[:, (T2 - 4) * CH:(T2 - 3) * CH],
                        p[:, (T2 - 2) * CH:(T2 - 1) * CH])
        h = conv_relu_bn(ext, w3_ref, b3_ref, m3_ref, a3_ref)   # (R, T4*16)

        # ---- per-sample flatten (lane order t*16 + c; head weight rearranged to match)
        if Rs == 1:
            flat = h                                    # (Bb, L4*16) already
        else:
            scr_ref = scr[0]
            scr_ref[...] = h
            flat = jnp.concatenate(
                [scr_ref[pl.ds(j, Bb, stride=Rs), :] for j in range(Rs)], axis=-1)

        # ---- F.normalize -> linear head -> F.normalize --------------------------------
        inv = lax.rsqrt(jnp.maximum(jnp.sum(flat * flat, axis=-1, keepdims=True), 1e-24))
        flat = flat * inv
        o = jnp.dot(flat, wr_ref[...], preferred_element_type=jnp.float32) + bl_ref[...]
        inv2 = lax.rsqrt(jnp.maximum(jnp.sum(o * o, axis=-1, keepdims=True), 1e-24))
        out_ref[...] = (o * inv2).astype(out_ref.dtype)

    return kernel


def _banded_weight(W, n_steps, cur_width, step_base, gw, cin):
    """Block-banded matmul weight for one conv layer in the packed-lane layout.

    W: (Cout, Cin_total, K) torch-layout conv weight (numpy, f32).
    Input lanes: `cur_width` lanes of packed current-row data (valid step s at lane
    step_base(s)+c) followed by four width-`gw` halo groups for steps -2, -1, n, n+1.
    Output lanes: step t at lane t*Cout + o.
    """
    cout = W.shape[0]
    big = np.zeros((cur_width + 4 * gw, n_steps * cout), np.float32)

    def base(s):
        if 0 <= s < n_steps:
            return step_base(s)
        if s == -2:
            return cur_width
        if s == -1:
            return cur_width + gw
        if s == n_steps:
            return cur_width + 2 * gw
        return cur_width + 3 * gw            # s == n_steps + 1

    for t in range(n_steps):
        for k in range(K):
            b = base(t + k - 2)
            big[b:b + cin, t * cout:(t + 1) * cout] += W[:, :cin, k].T
    return big


def init_params(key, in_features, length, feat_dim):
    head_in = length // 4 * 16
    keys = jax.random.split(key, 20)
    p = {}
    p["W1"] = 0.1 * jax.random.normal(keys[0], (16, in_features, K), jnp.float32)
    p["b1"] = 0.1 * jax.random.normal(keys[1], (16,), jnp.float32)
    p["W2"] = 0.1 * jax.random.normal(keys[2], (16, 16, K), jnp.float32)
    p["b2"] = 0.1 * jax.random.normal(keys[3], (16,), jnp.float32)
    p["W3"] = 0.1 * jax.random.normal(keys[4], (16, 16, K), jnp.float32)
    p["b3"] = 0.1 * jax.random.normal(keys[5], (16,), jnp.float32)
    for i, n in enumerate(("1", "2", "3")):
        p[f"g{n}"] = 1.0 + 0.1 * jax.random.normal(keys[6 + i], (16,), jnp.float32)
        p[f"bt{n}"] = 0.1 * jax.random.normal(keys[9 + i], (16,), jnp.float32)
        p[f"rm{n}"] = 0.1 * jax.random.normal(keys[12 + i], (16,), jnp.float32)
        p[f"rv{n}"] = 1.0 + 0.5 * jax.random.uniform(keys[15 + i], (16,), jnp.float32)
    p["Wlin"] = 0.1 * jax.random.normal(keys[18], (feat_dim, head_in), jnp.float32)
    p["blin"] = 0.1 * jax.random.normal(keys[19], (feat_dim,), jnp.float32)
    return p


def siamese_forward(x_ncl, p, feat_dim):
    """Inference forward of SiameseNetwork(in_features, length, feat_dim, head='linear')."""
    B, Cin, L = x_ncl.shape
    assert L % 8 == 0 and L >= 8, "optimized packed layout needs length % 8 == 0"
    eps = 1e-5

    T = 16 if L % 16 == 0 else 8           # raw time steps packed per row
    Rs = L // T                            # rows per sample
    T2, T4 = T // 2, T // 4
    L4 = L // 4
    Cin_p = ((Cin + 7) // 8) * 8           # channel-pad so the input slab is lane dense

    # ---- host-side parameter preparation (would be precomputed once in real use) ------
    W1np = np.asarray(p["W1"], np.float32)
    W2np = np.asarray(p["W2"], np.float32)
    W3np = np.asarray(p["W3"], np.float32)

    w1b = _banded_weight(W1np, T, T * Cin_p, lambda s: s * Cin_p, Cin_p, Cin)
    w2b = _banded_weight(W2np, T2, (T - 1) * CH, lambda s: 2 * CH * s, CH, CH)
    w3b = _banded_weight(W3np, T4, (T2 - 1) * CH, lambda s: 2 * CH * s, CH, CH)

    def _tiled(v, n):
        return np.tile(np.asarray(v, np.float32).reshape(-1), n).reshape(1, -1)

    def _bn_fold(g, bt, rm, rv):
        s = np.asarray(g, np.float32) / np.sqrt(np.asarray(rv, np.float32) + eps)
        return s, np.asarray(bt, np.float32) - np.asarray(rm, np.float32) * s

    s1_, t1_ = _bn_fold(p["g1"], p["bt1"], p["rm1"], p["rv1"])
    s2_, t2_ = _bn_fold(p["g2"], p["bt2"], p["rm2"], p["rv2"])
    s3_, t3_ = _bn_fold(p["g3"], p["bt3"], p["rm3"], p["rv3"])
    b1v, m1v, a1v = _tiled(p["b1"], T), _tiled(s1_, T), _tiled(t1_, T)
    b2v, m2v, a2v = _tiled(p["b2"], T2), _tiled(s2_, T2), _tiled(t2_, T2)
    b3v, m3v, a3v = _tiled(p["b3"], T4), _tiled(s3_, T4), _tiled(t3_, T4)

    # Head weight rearranged so wr[t*16 + c, j] = Wlin[j, c*L4 + t] (torch flatten order).
    Wlin = np.asarray(p["Wlin"], np.float32)
    wrb = np.transpose(Wlin.reshape(feat_dim, CH, L4), (2, 1, 0)).reshape(L4 * CH, feat_dim)
    blv = np.asarray(p["blin"], np.float32).reshape(1, feat_dim)

    # ---- batch blocking: big blocks (amortize per-step overhead), VMEM-budget capped ---
    def _est_bytes(bb):
        rows = bb * Rs
        per_row = 4 * (3 * T * Cin_p + (T + 4) * Cin_p + 2 * T * CH + (T + 3) * CH
                       + 2 * T2 * CH + (T2 + 3) * CH + 3 * T4 * CH)
        per_sample = 4 * (2 * L4 * CH + 3 * feat_dim)
        fixed = 4 * 2 * (w1b.size + w2b.size + w3b.size + wrb.size + 16 * (T + T2 + T4) * 3)
        return rows * per_row + bb * per_sample + fixed

    B_pad8 = ((B + 7) // 8) * 8
    target_rows = 1024                          # matmul M rows per grid step
    bb_cap = max(8, (((target_rows + Rs - 1) // Rs) // 8) * 8)
    Bb = min(bb_cap, B_pad8)
    if Bb == B_pad8 and B_pad8 >= 16:
        Bb = ((B_pad8 // 2 + 7) // 8) * 8       # keep >= 2 grid steps (v7x dual-core)
    budget = 20 * 1024 * 1024                   # safe on v7x (64 MiB physical VMEM)
    while Bb > 8 and _est_bytes(Bb) > budget:
        Bb -= 8
    B_pad = ((B + Bb - 1) // Bb) * Bb           # pad batch instead of shrinking Bb

    try:
        vmem_cap = int(pltpu.get_tpu_info().vmem_capacity_bytes)
    except Exception:
        vmem_cap = 64 * 1024 * 1024
    vmem_limit = int(min(3 * vmem_cap // 4,
                         max(32 * 1024 * 1024, 2 * _est_bytes(Bb))))

    # ---- lane-dense input packing: row = (sample, T-step block), lane = t*Cin_p + c ----
    x_t = jnp.transpose(x_ncl, (0, 2, 1)).astype(jnp.float32)          # (B, L, Cin)
    x_t = jnp.pad(x_t, ((0, B_pad - B), (0, 0), (0, Cin_p - Cin)))     # (B_pad, L, Cin_p)
    x_packed = x_t.reshape(B_pad * Rs, T * Cin_p)

    # Per-row position within its sample (masks for replicate-pad halo clamping).
    row_pos = jnp.tile(jnp.arange(Rs, dtype=jnp.int32), Bb).reshape(Bb * Rs, 1)

    inputs = (row_pos, x_packed,
              w1b, b1v, m1v, a1v,
              w2b, b2v, m2v, a2v,
              w3b, b3v, m3v, a3v,
              wrb, blv)
    in_specs = [pl.BlockSpec((Bb * Rs, 1), lambda i: (0, 0)),
                pl.BlockSpec((Bb * Rs, T * Cin_p), lambda i: (i, 0))] + \
               [_full_spec(np.asarray(a)) for a in inputs[2:]]

    scratch_shapes = [] if Rs == 1 else [pltpu.VMEM((Bb * Rs, T4 * CH), jnp.float32)]

    kernel = make_kernel(Bb, Rs, T, Cin_p)
    out = pl.pallas_call(
        kernel,
        out_shape=jax.ShapeDtypeStruct((B_pad, feat_dim), jnp.float32),
        grid=(B_pad // Bb,),
        in_specs=in_specs,
        out_specs=pl.BlockSpec((Bb, feat_dim), lambda i: (i, 0)),
        scratch_shapes=scratch_shapes,
        compiler_params=pltpu.CompilerParams(
            dimension_semantics=("parallel",),
            vmem_limit_bytes=vmem_limit),
    )(*inputs)
    return out[:B]


def reference_forward(x, p):
    # Pure-JAX reference of the same math (NCL layout, like PyTorch).
    eps = 1e-5

    def conv(h, W, b):
        L = h.shape[2]
        hp = jnp.pad(h, ((0, 0), (0, 0), (2, 2)), mode="edge")
        out = jnp.zeros((h.shape[0], W.shape[0], L), jnp.float32)
        for k in range(K):
            out = out + jnp.einsum("bcl,oc->bol", hp[:, :, k:k + L], W[:, :, k])
        return out + b[None, :, None]

    def bn(h, g, bt, rm, rv):
        return (h - rm[None, :, None]) / jnp.sqrt(rv[None, :, None] + eps) * \
            g[None, :, None] + bt[None, :, None]

    def pool(h):
        B, C, L = h.shape
        return jnp.max(h.reshape(B, C, L // 2, 2), axis=-1)

    h = bn(jnp.maximum(conv(x, p["W1"], p["b1"]), 0), p["g1"], p["bt1"], p["rm1"], p["rv1"])
    h = pool(h)
    h = bn(jnp.maximum(conv(h, p["W2"], p["b2"]), 0), p["g2"], p["bt2"], p["rm2"], p["rv2"])
    h = pool(h)
    h = bn(jnp.maximum(conv(h, p["W3"], p["b3"]), 0), p["g3"], p["bt3"], p["rm3"], p["rv3"])
    f = h.reshape(h.shape[0], -1)
    f = f / jnp.maximum(jnp.linalg.norm(f, axis=1, keepdims=True), 1e-12)
    o = f @ p["Wlin"].T + p["blin"][None, :]
    o = o / jnp.maximum(jnp.linalg.norm(o, axis=1, keepdims=True), 1e-12)
    return o


if __name__ == "__main__":
    B, in_features, length, feat_dim = 2, 4, 16, 128
    key = jax.random.PRNGKey(0)
    kx, kp = jax.random.split(key)
    x = jax.random.normal(kx, (B, in_features, length), jnp.float32)
    params = init_params(kp, in_features, length, feat_dim)

    out = siamese_forward(x, params, feat_dim)
    out = jax.block_until_ready(out)

    ref = reference_forward(x, params)
    np.testing.assert_allclose(np.asarray(out), np.asarray(ref), atol=1e-3, rtol=1e-3)
    print("KERNEL_OK")
</pallas_src>

<mosaic_0001>
module attributes {stable_mosaic.version = 11 : i64} {
  func.func @kernel(%arg0: i32, %arg1: memref<8x1xi32, #tpu.memory_space<vmem>>, %arg2: memref<8x128xf32, #tpu.memory_space<vmem>>, %arg3: memref<160x256xf32, #tpu.memory_space<vmem>>, %arg4: memref<1x256xf32, #tpu.memory_space<vmem>>, %arg5: memref<1x256xf32, #tpu.memory_space<vmem>>, %arg6: memref<1x256xf32, #tpu.memory_space<vmem>>, %arg7: memref<304x128xf32, #tpu.memory_space<vmem>>, %arg8: memref<1x128xf32, #tpu.memory_space<vmem>>, %arg9: memref<1x128xf32, #tpu.memory_space<vmem>>, %arg10: memref<1x128xf32, #tpu.memory_space<vmem>>, %arg11: memref<176x64xf32, #tpu.memory_space<vmem>>, %arg12: memref<1x64xf32, #tpu.memory_space<vmem>>, %arg13: memref<1x64xf32, #tpu.memory_space<vmem>>, %arg14: memref<1x64xf32, #tpu.memory_space<vmem>>, %arg15: memref<64x128xf32, #tpu.memory_space<vmem>>, %arg16: memref<1x128xf32, #tpu.memory_space<vmem>>, %arg17: memref<8x128xf32, #tpu.memory_space<vmem>>) attributes {dimension_semantics = [#tpu.dimension_semantics<parallel>], iteration_bounds = array<i64: 1>, scalar_prefetch = 0 : i64, scratch_operands = 0 : i64, tpu.core_type = #tpu.core_type<tc>, window_params = [{pipeline_mode = #tpu.pipeline_mode<synchronous>, transform_indices = @transform_0, window_bounds = array<i64: 8, 1>}, {transform_indices = @transform_1, window_bounds = array<i64: 8, 128>}, {pipeline_mode = #tpu.pipeline_mode<synchronous>, transform_indices = @transform_2, window_bounds = array<i64: 160, 256>}, {pipeline_mode = #tpu.pipeline_mode<synchronous>, transform_indices = @transform_3, window_bounds = array<i64: 1, 256>}, {pipeline_mode = #tpu.pipeline_mode<synchronous>, transform_indices = @transform_4, window_bounds = array<i64: 1, 256>}, {pipeline_mode = #tpu.pipeline_mode<synchronous>, transform_indices = @transform_5, window_bounds = array<i64: 1, 256>}, {pipeline_mode = #tpu.pipeline_mode<synchronous>, transform_indices = @transform_6, window_bounds = array<i64: 304, 128>}, {pipeline_mode = #tpu.pipeline_mode<synchronous>, transform_indices = @transform_7, window_bounds = array<i64: 1, 128>}, {pipeline_mode = #tpu.pipeline_mode<synchronous>, transform_indices = @transform_8, window_bounds = array<i64: 1, 128>}, {pipeline_mode = #tpu.pipeline_mode<synchronous>, transform_indices = @transform_9, window_bounds = array<i64: 1, 128>}, {pipeline_mode = #tpu.pipeline_mode<synchronous>, transform_indices = @transform_10, window_bounds = array<i64: 176, 64>}, {pipeline_mode = #tpu.pipeline_mode<synchronous>, transform_indices = @transform_11, window_bounds = array<i64: 1, 64>}, {pipeline_mode = #tpu.pipeline_mode<synchronous>, transform_indices = @transform_12, window_bounds = array<i64: 1, 64>}, {pipeline_mode = #tpu.pipeline_mode<synchronous>, transform_indices = @transform_13, window_bounds = array<i64: 1, 64>}, {pipeline_mode = #tpu.pipeline_mode<synchronous>, transform_indices = @transform_14, window_bounds = array<i64: 64, 128>}, {pipeline_mode = #tpu.pipeline_mode<synchronous>, transform_indices = @transform_15, window_bounds = array<i64: 1, 128>}, {transform_indices = @transform_16, window_bounds = array<i64: 8, 128>}]} {
    %c0 = arith.constant 0 : index
    %c0_0 = arith.constant 0 : index
    %0 = vector.load %arg1[%c0, %c0_0] : memref<8x1xi32, #tpu.memory_space<vmem>>, vector<8x1xi32>
    %c0_i32 = arith.constant 0 : i32
    %1 = vector.broadcast %c0_i32 : i32 to vector<8x1xi32>
    %2 = arith.cmpi eq, %0, %1 : vector<8x1xi32>
    %c0_i32_1 = arith.constant 0 : i32
    %3 = vector.broadcast %c0_i32_1 : i32 to vector<8x1xi32>
    %4 = arith.cmpi eq, %0, %3 : vector<8x1xi32>
    %c0_2 = arith.constant 0 : index
    %c0_3 = arith.constant 0 : index
    %5 = vector.load %arg2[%c0_2, %c0_3] : memref<8x128xf32, #tpu.memory_space<vmem>>, vector<8x128xf32>
    %6 = vector.extract_strided_slice %5 {offsets = [0, 0], sizes = [8, 8], strides = [1, 1]} : vector<8x128xf32> to vector<8x8xf32>
    %7 = vector.extract_strided_slice %5 {offsets = [0, 8], sizes = [8, 8], strides = [1, 1]} : vector<8x128xf32> to vector<8x8xf32>
    %8 = vector.extract_strided_slice %5 {offsets = [0, 112], sizes = [8, 8], strides = [1, 1]} : vector<8x128xf32> to vector<8x8xf32>
    %9 = vector.extract_strided_slice %5 {offsets = [0, 120], sizes = [8, 8], strides = [1, 1]} : vector<8x128xf32> to vector<8x8xf32>
    %10 = vector.extract_strided_slice %8 {offsets = [0, 0], sizes = [1, 8], strides = [1, 1]} : vector<8x8xf32> to vector<1x8xf32>
    %11 = vector.extract_strided_slice %8 {offsets = [0, 0], sizes = [7, 8], strides = [1, 1]} : vector<8x8xf32> to vector<7x8xf32>
    %12 = tpu.concatenate %10, %11 in 0 : vector<1x8xf32>, vector<7x8xf32> -> vector<8x8xf32>
    %13 = vector.shape_cast %2 : vector<8x1xi1> to vector<8x1xi1>
    %14 = vector.broadcast %13 : vector<8x1xi1> to vector<8x8xi1>
    %15 = arith.select %14, %6, %12 : vector<8x8xi1>, vector<8x8xf32>
    %16 = vector.extract_strided_slice %9 {offsets = [0, 0], sizes = [1, 8], strides = [1, 1]} : vector<8x8xf32> to vector<1x8xf32>
    %17 = vector.extract_strided_slice %9 {offsets = [0, 0], sizes = [7, 8], strides = [1, 1]} : vector<8x8xf32> to vector<7x8xf32>
    %18 = tpu.concatenate %16, %17 in 0 : vector<1x8xf32>, vector<7x8xf32> -> vector<8x8xf32>
    %19 = vector.shape_cast %2 : vector<8x1xi1> to vector<8x1xi1>
    %20 = vector.broadcast %19 : vector<8x1xi1> to vector<8x8xi1>
    %21 = arith.select %20, %6, %18 : vector<8x8xi1>, vector<8x8xf32>
    %22 = vector.extract_strided_slice %6 {offsets = [1, 0], sizes = [7, 8], strides = [1, 1]} : vector<8x8xf32> to vector<7x8xf32>
    %23 = vector.extract_strided_slice %6 {offsets = [7, 0], sizes = [1, 8], strides = [1, 1]} : vector<8x8xf32> to vector<1x8xf32>
    %24 = tpu.concatenate %22, %23 in 0 : vector<7x8xf32>, vector<1x8xf32> -> vector<8x8xf32>
    %25 = vector.shape_cast %4 : vector<8x1xi1> to vector<8x1xi1>
    %26 = vector.broadcast %25 : vector<8x1xi1> to vector<8x8xi1>
    %27 = arith.select %26, %9, %24 : vector<8x8xi1>, vector<8x8xf32>
    %28 = vector.extract_strided_slice %7 {offsets = [1, 0], sizes = [7, 8], strides = [1, 1]} : vector<8x8xf32> to vector<7x8xf32>
    %29 = vector.extract_strided_slice %7 {offsets = [7, 0], sizes = [1, 8], strides = [1, 1]} : vector<8x8xf32> to vector<1x8xf32>
    %30 = tpu.concatenate %28, %29 in 0 : vector<7x8xf32>, vector<1x8xf32> -> vector<8x8xf32>
    %31 = vector.shape_cast %4 : vector<8x1xi1> to vector<8x1xi1>
    %32 = vector.broadcast %31 : vector<8x1xi1> to vector<8x8xi1>
    %33 = arith.select %32, %9, %30 : vector<8x8xi1>, vector<8x8xf32>
    %34 = tpu.concatenate %5, %15, %21, %27, %33 in 1 : vector<8x128xf32>, vector<8x8xf32>, vector<8x8xf32>, vector<8x8xf32>, vector<8x8xf32> -> vector<8x160xf32>
    %c0_4 = arith.constant 0 : index
    %c0_5 = arith.constant 0 : index
    %35 = vector.load %arg3[%c0_4, %c0_5] : memref<160x256xf32, #tpu.memory_space<vmem>>, vector<160x256xf32>
    %cst = arith.constant dense<0.000000e+00> : vector<8x256xf32>
    %36 = tpu.matmul %34, %35, %cst {dimension_numbers = #tpu.dot_dimension_numbers<[1], [0], [0], [1], [0, 0, 1, 1], [], []>} : vector<8x160xf32>, vector<160x256xf32>, vector<8x256xf32> -> vector<8x256xf32>
    %c0_6 = arith.constant 0 : index
    %c0_7 = arith.constant 0 : index
    %37 = vector.load %arg4[%c0_6, %c0_7] : memref<1x256xf32, #tpu.memory_space<vmem>>, vector<1x256xf32>
    %38 = vector.broadcast %37 : vector<1x256xf32> to vector<8x256xf32>
    %39 = arith.addf %36, %38 : vector<8x256xf32>
    %cst_8 = arith.constant 0.000000e+00 : f32
    %40 = vector.broadcast %cst_8 : f32 to vector<8x256xf32>
    %41 = arith.maximumf %39, %40 : vector<8x256xf32>
    %c0_9 = arith.constant 0 : index
    %c0_10 = arith.constant 0 : index
    %42 = vector.load %arg5[%c0_9, %c0_10] : memref<1x256xf32, #tpu.memory_space<vmem>>, vector<1x256xf32>
    %43 = vector.broadcast %42 : vector<1x256xf32> to vector<8x256xf32>
    %44 = arith.mulf %41, %43 : vector<8x256xf32>
    %c0_11 = arith.constant 0 : index
    %c0_12 = arith.constant 0 : index
    %45 = vector.load %arg6[%c0_11, %c0_12] : memref<1x256xf32, #tpu.memory_space<vmem>>, vector<1x256xf32>
    %46 = vector.broadcast %45 : vector<1x256xf32> to vector<8x256xf32>
    %47 = arith.addf %44, %46 : vector<8x256xf32>
    %48 = vector.extract_strided_slice %47 {offsets = [0, 0], sizes = [8, 240], strides = [1, 1]} : vector<8x256xf32> to vector<8x240xf32>
    %49 = vector.extract_strided_slice %47 {offsets = [0, 16], sizes = [8, 240], strides = [1, 1]} : vector<8x256xf32> to vector<8x240xf32>
    %50 = arith.maximumf %48, %49 : vector<8x240xf32>
    %51 = vector.extract_strided_slice %50 {offsets = [0, 0], sizes = [8, 16], strides = [1, 1]} : vector<8x240xf32> to vector<8x16xf32>
    %52 = vector.extract_strided_slice %50 {offsets = [0, 32], sizes = [8, 16], strides = [1, 1]} : vector<8x240xf32> to vector<8x16xf32>
    %53 = vector.extract_strided_slice %50 {offsets = [0, 192], sizes = [8, 16], strides = [1, 1]} : vector<8x240xf32> to vector<8x16xf32>
    %54 = vector.extract_strided_slice %50 {offsets = [0, 224], sizes = [8, 16], strides = [1, 1]} : vector<8x240xf32> to vector<8x16xf32>
    %55 = vector.extract_strided_slice %53 {offsets = [0, 0], sizes = [1, 16], strides = [1, 1]} : vector<8x16xf32> to vector<1x16xf32>
    %56 = vector.extract_strided_slice %53 {offsets = [0, 0], sizes = [7, 16], strides = [1, 1]} : vector<8x16xf32> to vector<7x16xf32>
    %57 = tpu.concatenate %55, %56 in 0 : vector<1x16xf32>, vector<7x16xf32> -> vector<8x16xf32>
    %58 = vector.shape_cast %2 : vector<8x1xi1> to vector<8x1xi1>
    %59 = vector.broadcast %58 : vector<8x1xi1> to vector<8x16xi1>
    %60 = arith.select %59, %51, %57 : vector<8x16xi1>, vector<8x16xf32>
    %61 = vector.extract_strided_slice %54 {offsets = [0, 0], sizes = [1, 16], strides = [1, 1]} : vector<8x16xf32> to vector<1x16xf32>
    %62 = vector.extract_strided_slice %54 {offsets = [0, 0], sizes = [7, 16], strides = [1, 1]} : vector<8x16xf32> to vector<7x16xf32>
    %63 = tpu.concatenate %61, %62 in 0 : vector<1x16xf32>, vector<7x16xf32> -> vector<8x16xf32>
    %64 = vector.shape_cast %2 : vector<8x1xi1> to vector<8x1xi1>
    %65 = vector.broadcast %64 : vector<8x1xi1> to vector<8x16xi1>
    %66 = arith.select %65, %51, %63 : vector<8x16xi1>, vector<8x16xf32>
    %67 = vector.extract_strided_slice %51 {offsets = [1, 0], sizes = [7, 16], strides = [1, 1]} : vector<8x16xf32> to vector<7x16xf32>
    %68 = vector.extract_strided_slice %51 {offsets = [7, 0], sizes = [1, 16], strides = [1, 1]} : vector<8x16xf32> to vector<1x16xf32>
    %69 = tpu.concatenate %67, %68 in 0 : vector<7x16xf32>, vector<1x16xf32> -> vector<8x16xf32>
    %70 = vector.shape_cast %4 : vector<8x1xi1> to vector<8x1xi1>
    %71 = vector.broadcast %70 : vector<8x1xi1> to vector<8x16xi1>
    %72 = arith.select %71, %54, %69 : vector<8x16xi1>, vector<8x16xf32>
    %73 = vector.extract_strided_slice %52 {offsets = [1, 0], sizes = [7, 16], strides = [1, 1]} : vector<8x16xf32> to vector<7x16xf32>
    %74 = vector.extract_strided_slice %52 {offsets = [7, 0], sizes = [1, 16], strides = [1, 1]} : vector<8x16xf32> to vector<1x16xf32>
    %75 = tpu.concatenate %73, %74 in 0 : vector<7x16xf32>, vector<1x16xf32> -> vector<8x16xf32>
    %76 = vector.shape_cast %4 : vector<8x1xi1> to vector<8x1xi1>
    %77 = vector.broadcast %76 : vector<8x1xi1> to vector<8x16xi1>
    %78 = arith.select %77, %54, %75 : vector<8x16xi1>, vector<8x16xf32>
    %79 = tpu.concatenate %50, %60, %66, %72, %78 in 1 : vector<8x240xf32>, vector<8x16xf32>, vector<8x16xf32>, vector<8x16xf32>, vector<8x16xf32> -> vector<8x304xf32>
    %c0_13 = arith.constant 0 : index
    %c0_14 = arith.constant 0 : index
    %80 = vector.load %arg7[%c0_13, %c0_14] : memref<304x128xf32, #tpu.memory_space<vmem>>, vector<304x128xf32>
    %cst_15 = arith.constant dense<0.000000e+00> : vector<8x128xf32>
    %81 = tpu.matmul %79, %80, %cst_15 {dimension_numbers = #tpu.dot_dimension_numbers<[1], [0], [0], [1], [0, 0, 1, 1], [], []>} : vector<8x304xf32>, vector<304x128xf32>, vector<8x128xf32> -> vector<8x128xf32>
    %c0_16 = arith.constant 0 : index
    %c0_17 = arith.constant 0 : index
    %82 = vector.load %arg8[%c0_16, %c0_17] : memref<1x128xf32, #tpu.memory_space<vmem>>, vector<1x128xf32>
    %83 = vector.broadcast %82 : vector<1x128xf32> to vector<8x128xf32>
    %84 = arith.addf %81, %83 : vector<8x128xf32>
    %cst_18 = arith.constant 0.000000e+00 : f32
    %85 = vector.broadcast %cst_18 : f32 to vector<8x128xf32>
    %86 = arith.maximumf %84, %85 : vector<8x128xf32>
    %c0_19 = arith.constant 0 : index
    %c0_20 = arith.constant 0 : index
    %87 = vector.load %arg9[%c0_19, %c0_20] : memref<1x128xf32, #tpu.memory_space<vmem>>, vector<1x128xf32>
    %88 = vector.broadcast %87 : vector<1x128xf32> to vector<8x128xf32>
    %89 = arith.mulf %86, %88 : vector<8x128xf32>
    %c0_21 = arith.constant 0 : index
    %c0_22 = arith.constant 0 : index
    %90 = vector.load %arg10[%c0_21, %c0_22] : memref<1x128xf32, #tpu.memory_space<vmem>>, vector<1x128xf32>
    %91 = vector.broadcast %90 : vector<1x128xf32> to vector<8x128xf32>
    %92 = arith.addf %89, %91 : vector<8x128xf32>
    %93 = vector.extract_strided_slice %92 {offsets = [0, 0], sizes = [8, 112], strides = [1, 1]} : vector<8x128xf32> to vector<8x112xf32>
    %94 = vector.extract_strided_slice %92 {offsets = [0, 16], sizes = [8, 112], strides = [1, 1]} : vector<8x128xf32> to vector<8x112xf32>
    %95 = arith.maximumf %93, %94 : vector<8x112xf32>
    %96 = vector.extract_strided_slice %95 {offsets = [0, 0], sizes = [8, 16], strides = [1, 1]} : vector<8x112xf32> to vector<8x16xf32>
    %97 = vector.extract_strided_slice %95 {offsets = [0, 32], sizes = [8, 16], strides = [1, 1]} : vector<8x112xf32> to vector<8x16xf32>
    %98 = vector.extract_strided_slice %95 {offsets = [0, 64], sizes = [8, 16], strides = [1, 1]} : vector<8x112xf32> to vector<8x16xf32>
    %99 = vector.extract_strided_slice %95 {offsets = [0, 96], sizes = [8, 16], strides = [1, 1]} : vector<8x112xf32> to vector<8x16xf32>
    %100 = vector.extract_strided_slice %98 {offsets = [0, 0], sizes = [1, 16], strides = [1, 1]} : vector<8x16xf32> to vector<1x16xf32>
    %101 = vector.extract_strided_slice %98 {offsets = [0, 0], sizes = [7, 16], strides = [1, 1]} : vector<8x16xf32> to vector<7x16xf32>
    %102 = tpu.concatenate %100, %101 in 0 : vector<1x16xf32>, vector<7x16xf32> -> vector<8x16xf32>
    %103 = vector.shape_cast %2 : vector<8x1xi1> to vector<8x1xi1>
    %104 = vector.broadcast %103 : vector<8x1xi1> to vector<8x16xi1>
    %105 = arith.select %104, %96, %102 : vector<8x16xi1>, vector<8x16xf32>
    %106 = vector.extract_strided_slice %99 {offsets = [0, 0], sizes = [1, 16], strides = [1, 1]} : vector<8x16xf32> to vector<1x16xf32>
    %107 = vector.extract_strided_slice %99 {offsets = [0, 0], sizes = [7, 16], strides = [1, 1]} : vector<8x16xf32> to vector<7x16xf32>
    %108 = tpu.concatenate %106, %107 in 0 : vector<1x16xf32>, vector<7x16xf32> -> vector<8x16xf32>
    %109 = vector.shape_cast %2 : vector<8x1xi1> to vector<8x1xi1>
    %110 = vector.broadcast %109 : vector<8x1xi1> to vector<8x16xi1>
    %111 = arith.select %110, %96, %108 : vector<8x16xi1>, vector<8x16xf32>
    %112 = vector.extract_strided_slice %96 {offsets = [1, 0], sizes = [7, 16], strides = [1, 1]} : vector<8x16xf32> to vector<7x16xf32>
    %113 = vector.extract_strided_slice %96 {offsets = [7, 0], sizes = [1, 16], strides = [1, 1]} : vector<8x16xf32> to vector<1x16xf32>
    %114 = tpu.concatenate %112, %113 in 0 : vector<7x16xf32>, vector<1x16xf32> -> vector<8x16xf32>
    %115 = vector.shape_cast %4 : vector<8x1xi1> to vector<8x1xi1>
    %116 = vector.broadcast %115 : vector<8x1xi1> to vector<8x16xi1>
    %117 = arith.select %116, %99, %114 : vector<8x16xi1>, vector<8x16xf32>
    %118 = vector.extract_strided_slice %97 {offsets = [1, 0], sizes = [7, 16], strides = [1, 1]} : vector<8x16xf32> to vector<7x16xf32>
    %119 = vector.extract_strided_slice %97 {offsets = [7, 0], sizes = [1, 16], strides = [1, 1]} : vector<8x16xf32> to vector<1x16xf32>
    %120 = tpu.concatenate %118, %119 in 0 : vector<7x16xf32>, vector<1x16xf32> -> vector<8x16xf32>
    %121 = vector.shape_cast %4 : vector<8x1xi1> to vector<8x1xi1>
    %122 = vector.broadcast %121 : vector<8x1xi1> to vector<8x16xi1>
    %123 = arith.select %122, %99, %120 : vector<8x16xi1>, vector<8x16xf32>
    %124 = tpu.concatenate %95, %105, %111, %117, %123 in 1 : vector<8x112xf32>, vector<8x16xf32>, vector<8x16xf32>, vector<8x16xf32>, vector<8x16xf32> -> vector<8x176xf32>
    %c0_23 = arith.constant 0 : index
    %c0_24 = arith.constant 0 : index
    %125 = vector.load %arg11[%c0_23, %c0_24] : memref<176x64xf32, #tpu.memory_space<vmem>>, vector<176x64xf32>
    %cst_25 = arith.constant dense<0.000000e+00> : vector<8x64xf32>
    %126 = tpu.matmul %124, %125, %cst_25 {dimension_numbers = #tpu.dot_dimension_numbers<[1], [0], [0], [1], [0, 0, 1, 1], [], []>} : vector<8x176xf32>, vector<176x64xf32>, vector<8x64xf32> -> vector<8x64xf32>
    %c0_26 = arith.constant 0 : index
    %c0_27 = arith.constant 0 : index
    %127 = vector.load %arg12[%c0_26, %c0_27] : memref<1x64xf32, #tpu.memory_space<vmem>>, vector<1x64xf32>
    %128 = vector.broadcast %127 : vector<1x64xf32> to vector<8x64xf32>
    %129 = arith.addf %126, %128 : vector<8x64xf32>
    %cst_28 = arith.constant 0.000000e+00 : f32
    %130 = vector.broadcast %cst_28 : f32 to vector<8x64xf32>
    %131 = arith.maximumf %129, %130 : vector<8x64xf32>
    %c0_29 = arith.constant 0 : index
    %c0_30 = arith.constant 0 : index
    %132 = vector.load %arg13[%c0_29, %c0_30] : memref<1x64xf32, #tpu.memory_space<vmem>>, vector<1x64xf32>
    %133 = vector.broadcast %132 : vector<1x64xf32> to vector<8x64xf32>
    %134 = arith.mulf %131, %133 : vector<8x64xf32>
    %c0_31 = arith.constant 0 : index
    %c0_32 = arith.constant 0 : index
    %135 = vector.load %arg14[%c0_31, %c0_32] : memref<1x64xf32, #tpu.memory_space<vmem>>, vector<1x64xf32>
    %136 = vector.broadcast %135 : vector<1x64xf32> to vector<8x64xf32>
    %137 = arith.addf %134, %136 : vector<8x64xf32>
    %138 = arith.mulf %137, %137 : vector<8x64xf32>
    %cst_33 = arith.constant dense<0.000000e+00> : vector<8xf32>
    %139 = vector.multi_reduction <add>, %138, %cst_33 [1] : vector<8x64xf32> to vector<8xf32>
    %140 = vector.shape_cast %139 : vector<8xf32> to vector<8x1xf32>
    %cst_34 = arith.constant 1.000000e-24 : f32
    %141 = vector.broadcast %cst_34 : f32 to vector<8x1xf32>
    %142 = arith.maximumf %140, %141 : vector<8x1xf32>
    %143 = math.rsqrt %142 : vector<8x1xf32>
    %144 = vector.broadcast %143 : vector<8x1xf32> to vector<8x64xf32>
    %145 = arith.mulf %137, %144 : vector<8x64xf32>
    %c0_35 = arith.constant 0 : index
    %c0_36 = arith.constant 0 : index
    %146 = vector.load %arg15[%c0_35, %c0_36] : memref<64x128xf32, #tpu.memory_space<vmem>>, vector<64x128xf32>
    %cst_37 = arith.constant dense<0.000000e+00> : vector<8x128xf32>
    %147 = tpu.matmul %145, %146, %cst_37 {dimension_numbers = #tpu.dot_dimension_numbers<[1], [0], [0], [1], [0, 0, 1, 1], [], []>} : vector<8x64xf32>, vector<64x128xf32>, vector<8x128xf32> -> vector<8x128xf32>
    %c0_38 = arith.constant 0 : index
    %c0_39 = arith.constant 0 : index
    %148 = vector.load %arg16[%c0_38, %c0_39] : memref<1x128xf32, #tpu.memory_space<vmem>>, vector<1x128xf32>
    %149 = vector.broadcast %148 : vector<1x128xf32> to vector<8x128xf32>
    %150 = arith.addf %147, %149 : vector<8x128xf32>
    %151 = arith.mulf %150, %150 : vector<8x128xf32>
    %cst_40 = arith.constant dense<0.000000e+00> : vector<8xf32>
    %152 = vector.multi_reduction <add>, %151, %cst_40 [1] : vector<8x128xf32> to vector<8xf32>
    %153 = vector.shape_cast %152 : vector<8xf32> to vector<8x1xf32>
    %cst_41 = arith.constant 1.000000e-24 : f32
    %154 = vector.broadcast %cst_41 : f32 to vector<8x1xf32>
    %155 = arith.maximumf %153, %154 : vector<8x1xf32>
    %156 = math.rsqrt %155 : vector<8x1xf32>
    %157 = vector.broadcast %156 : vector<8x1xf32> to vector<8x128xf32>
    %158 = arith.mulf %150, %157 : vector<8x128xf32>
    %c0_42 = arith.constant 0 : index
    %c0_43 = arith.constant 0 : index
    %159 = vector.load %arg17[%c0_42, %c0_43] : memref<8x128xf32, #tpu.memory_space<vmem>>, vector<8x128xf32>
    tpu.vector_store %arg17[%c0_42, %c0_43], %158 {strides = array<i32>} : memref<8x128xf32, #tpu.memory_space<vmem>>, vector<8x128xf32>,
    return
  }
  func.func @transform_0(%arg0: i32) -> (i32, i32) {
    %c0_i32 = arith.constant 0 : i32
    %c0_i32_0 = arith.constant 0 : i32
    %c0_i32_1 = arith.constant 0 : i32
    return %c0_i32, %c0_i32_0 : i32, i32
  }
  func.func @transform_1(%arg0: i32) -> (i32, i32) {
    %c0_i32 = arith.constant 0 : i32
    %c0_i32_0 = arith.constant 0 : i32
    return %arg0, %c0_i32 : i32, i32
  }
  func.func @transform_2(%arg0: i32) -> (i32, i32) {
    %c0_i32 = arith.constant 0 : i32
    %c0_i32_0 = arith.constant 0 : i32
    %c0_i32_1 = arith.constant 0 : i32
    return %c0_i32, %c0_i32_0 : i32, i32
  }
  func.func @transform_3(%arg0: i32) -> (i32, i32) {
    %c0_i32 = arith.constant 0 : i32
    %c0_i32_0 = arith.constant 0 : i32
    %c0_i32_1 = arith.constant 0 : i32
    return %c0_i32, %c0_i32_0 : i32, i32
  }
  func.func @transform_4(%arg0: i32) -> (i32, i32) {
    %c0_i32 = arith.constant 0 : i32
    %c0_i32_0 = arith.constant 0 : i32
    %c0_i32_1 = arith.constant 0 : i32
    return %c0_i32, %c0_i32_0 : i32, i32
  }
  func.func @transform_5(%arg0: i32) -> (i32, i32) {
    %c0_i32 = arith.constant 0 : i32
    %c0_i32_0 = arith.constant 0 : i32
    %c0_i32_1 = arith.constant 0 : i32
    return %c0_i32, %c0_i32_0 : i32, i32
  }
  func.func @transform_6(%arg0: i32) -> (i32, i32) {
    %c0_i32 = arith.constant 0 : i32
    %c0_i32_0 = arith.constant 0 : i32
    %c0_i32_1 = arith.constant 0 : i32
    return %c0_i32, %c0_i32_0 : i32, i32
  }
  func.func @transform_7(%arg0: i32) -> (i32, i32) {
    %c0_i32 = arith.constant 0 : i32
    %c0_i32_0 = arith.constant 0 : i32
    %c0_i32_1 = arith.constant 0 : i32
    return %c0_i32, %c0_i32_0 : i32, i32
  }
  func.func @transform_8(%arg0: i32) -> (i32, i32) {
    %c0_i32 = arith.constant 0 : i32
    %c0_i32_0 = arith.constant 0 : i32
    %c0_i32_1 = arith.constant 0 : i32
    return %c0_i32, %c0_i32_0 : i32, i32
  }
  func.func @transform_9(%arg0: i32) -> (i32, i32) {
    %c0_i32 = arith.constant 0 : i32
    %c0_i32_0 = arith.constant 0 : i32
    %c0_i32_1 = arith.constant 0 : i32
    return %c0_i32, %c0_i32_0 : i32, i32
  }
  func.func @transform_10(%arg0: i32) -> (i32, i32) {
    %c0_i32 = arith.constant 0 : i32
    %c0_i32_0 = arith.constant 0 : i32
    %c0_i32_1 = arith.constant 0 : i32
    return %c0_i32, %c0_i32_0 : i32, i32
  }
  func.func @transform_11(%arg0: i32) -> (i32, i32) {
    %c0_i32 = arith.constant 0 : i32
    %c0_i32_0 = arith.constant 0 : i32
    %c0_i32_1 = arith.constant 0 : i32
    return %c0_i32, %c0_i32_0 : i32, i32
  }
  func.func @transform_12(%arg0: i32) -> (i32, i32) {
    %c0_i32 = arith.constant 0 : i32
    %c0_i32_0 = arith.constant 0 : i32
    %c0_i32_1 = arith.constant 0 : i32
    return %c0_i32, %c0_i32_0 : i32, i32
  }
  func.func @transform_13(%arg0: i32) -> (i32, i32) {
    %c0_i32 = arith.constant 0 : i32
    %c0_i32_0 = arith.constant 0 : i32
    %c0_i32_1 = arith.constant 0 : i32
    return %c0_i32, %c0_i32_0 : i32, i32
  }
  func.func @transform_14(%arg0: i32) -> (i32, i32) {
    %c0_i32 = arith.constant 0 : i32
    %c0_i32_0 = arith.constant 0 : i32
    %c0_i32_1 = arith.constant 0 : i32
    return %c0_i32, %c0_i32_0 : i32, i32
  }
  func.func @transform_15(%arg0: i32) -> (i32, i32) {
    %c0_i32 = arith.constant 0 : i32
    %c0_i32_0 = arith.constant 0 : i32
    %c0_i32_1 = arith.constant 0 : i32
    return %c0_i32, %c0_i32_0 : i32, i32
  }
  func.func @transform_16(%arg0: i32) -> (i32, i32) {
    %c0_i32 = arith.constant 0 : i32
    %c0_i32_0 = arith.constant 0 : i32
    return %arg0, %c0_i32 : i32, i32
  }
}

</mosaic_0001>

<bundles_post_ra>
// kernel: tpu_custom_call.1
= control target key start
LH: loop header
LB: loop body
LE: loop exit
PB: predicated region body
PF: predicated region fallthrough
CT: control target
= control target key end

     0   :  { %s1293_s0 = inlined_call_operand.vmem [shape: s32[8,1], index: 0, kind: input, shape index: {}]   ;;  %s1294_s1 = inlined_call_operand.vmem [shape: f32[8,128], index: 1, kind: input, shape index: {}]   ;;  %s1295_s2 = inlined_call_operand.hbm [shape: f32[160,256], index: 2, kind: input, shape index: {}]   ;;  %s1296_s3 = inlined_call_operand.vmem [shape: f32[1,256], index: 3, kind: input, shape index: {}]   ;;  %s1297_s4 = inlined_call_operand.vmem [shape: f32[1,256], index: 4, kind: input, shape index: {}]   ;;  %s1298_s5 = inlined_call_operand.vmem [shape: f32[1,256], index: 5, kind: input, shape index: {}]   ;;  %s1299_s6 = inlined_call_operand.vmem [shape: f32[304,128], index: 6, kind: input, shape index: {}]   ;;  %s1300_s7 = inlined_call_operand.hbm [shape: f32[1,128], index: 7, kind: input, shape index: {}]   ;;  %s1301_s8 = inlined_call_operand.vmem [shape: f32[1,128], index: 8, kind: input, shape index: {}]   ;;  %s1302_s9 = inlined_call_operand.vmem [shape: f32[1,128], index: 9, kind: input, shape index: {}]   ;;  %s1303_s10 = inlined_call_operand.vmem [shape: f32[176,64], index: 10, kind: input, shape index: {}]   ;;  %s1304_s11 = inlined_call_operand.hbm [shape: f32[1,64], index: 11, kind: input, shape index: {}]   ;;  %s1305_s12 = inlined_call_operand.vmem [shape: f32[1,64], index: 12, kind: input, shape index: {}]   ;;  %s1306_s13 = inlined_call_operand.vmem [shape: f32[1,64], index: 13, kind: input, shape index: {}]   ;;  %s1307_s14 = inlined_call_operand.hbm [shape: f32[64,128], index: 14, kind: input, shape index: {}]   ;;  %s1308_s15 = inlined_call_operand.vmem [shape: f32[1,128], index: 15, kind: input, shape index: {}]   ;;  %s1309_s16 = inlined_call_operand.hbm [shape: f32[8,128], index: 16, kind: output, shape index: {}]  }
   0x1   :  { %1310 = sst [smem:[#allocation15_spill]] %s1293_s0 }
   0x2   :  { %21 = vsyncpa [#allocation3], 0 }
   0x3   :  { %22 = vsyncpa [#allocation6], 0 }
   0x4   :  { %23 = vsyncpa [#allocation9], 0  ;;  %s55_s23 = sshll.u32 %s1300_s7, 4  ;;  %s56_s23 = int_to_ptr.hbm [resolvable:$true] %s55_s23 }
   0x5   :  { %24 = vsyncpa [#allocation4], 0  ;;  %s858_s24 = smov [#allocation5]   ;;  %s33_s28 = sshll.u32 %s1295_s2, 4  ;;  %s34_s28 = int_to_ptr.hbm [resolvable:$true] %s33_s28 }
   0x6   :  { %s57_s25 = sshll.u32 %s858_s24, 4  ;;  %s859_s29 = smov [#allocation2]   ;;  %s58_s25 = int_to_ptr.vmem [resolvable:$true] %s57_s25 }
   0x7   :  { %60 = dma.hbm_to_vmem [thread:$0]  %s56_s23, 16, %s58_s25, [#allocation6]  }
   0x8   :  { %s35_s30 = sshll.u32 %s859_s29, 4  ;;  %s860_s0 = smov 256   ;;  %s36_s30 = int_to_ptr.vmem [resolvable:$true] %s35_s30 }
   0x9   :  { %s861_s17 = smov 16   ;;  %s72_s19 = sshll.u32 %s1304_s11, 4  ;;  %s73_s19 = int_to_ptr.hbm [resolvable:$true] %s72_s19 }
   0xa   :  { %41 = dma.hbm_to_vmem [thread:$0]  %s34_s28, 5120, %s36_s30, [#allocation3], %s860_s0, %s860_s0, %s861_s17  }
   0xb   :  { %s862_s20 = smov [#allocation7]   ;;  %s86_s2 = sshll.u32 %s1307_s14, 4  ;;  %s87_s2 = int_to_ptr.hbm [resolvable:$true] %s86_s2 }
   0xc   :  { %s74_s21 = sshll.u32 %s862_s20, 4  ;;  %s863_s23 = smov [#allocation8]   ;;  %s75_s21 = int_to_ptr.vmem [resolvable:$true] %s74_s21 }
   0xd   :  { %77 = dma.hbm_to_vmem [thread:$0]  %s73_s19, 16, %s75_s21, [#allocation6]  }
   0xe   :  { %s88_s25 = sshll.u32 %s863_s23, 4  ;;  %s864_s26 = smov 128   ;;  %s89_s25 = int_to_ptr.vmem [resolvable:$true] %s88_s25 }
   0xf   :  { %s865_s27 = smov 8  }
  0x10   :  { %94 = dma.hbm_to_vmem [thread:$0]  %s87_s2, 1024, %s89_s25, [#allocation9], %s864_s26, %s864_s26, %s865_s27  }
  0x11   :  { %850 = dma.done.wait [#allocation3], 5120  }
  0x12   :  { %851 = vsyncadd [#allocation3], 4294962176 }
  0x13   :  { %852 = dma.done.wait [#allocation6], 32  }
  0x14   :  { %853 = vsyncadd [#allocation6], 4294967264 }
  0x15   :  { %854 = dma.done.wait [#allocation9], 1024  }
  0x16   :  { %855 = vsyncadd [#allocation9], 4294966272  ;;  %v866_v0 = vmov 0   ;;  %s1311_s14 = sld [smem:[#allocation15_spill]]  ;;  %v980_v2 = vld [vmem:[%s1294_s1] sm:$0xff]  ;;  %vm137_vm0 = vcmask 1046528  }
  0x17   :  { %718 = vset.pattern.permute.xlu0 %v866_v0  ;;  %vm119_vm1 = vcmask 1040384   ;;  %v135_v3 = vrot.slane %v980_v2, 1  ;;  %v117_v4 = vrot.slane %v980_v2, 7  ;;  %s867_s0 = smov 120   ;;  %s868_s1 = smov 112   ;;  %v196_v8 = vld [vmem:[#allocation2 + $0xf0] sm:$0xff] }
  0x18   :  { %v197_v9 = vld [vmem:[#allocation2 + $0xf8] sm:$0xff]  ;;  %v194_v10 = vld [vmem:[#allocation2 + $0xe0] sm:$0xff]  ;;  %216 = vmatpush.msra.mxu0 %v196_v8  ;;  %v195_v11 = vld [vmem:[#allocation2 + $0xe8] sm:$0xff]  ;;  %s870_s18 = smov 32   ;;  %vm160_vm4 = vcmask 64512   ;;  %vm162_vm5 = vcmask 130048  }
  0x19   :  { %v138_v6 = vsel %vm137_vm0, %v135_v3, %v980_v2  ;;  %v120_v7 = vsel %vm119_vm1, %v980_v2, %v117_v4  ;;  %256 = vmatpush.msra.mxu2 %v197_v9  ;;  %v192_v12 = vld [vmem:[#allocation2 + $0xd0] sm:$0xff]  ;;  %v193_v13 = vld [vmem:[#allocation2 + $0xd8] sm:$0xff]  ;;  %v190_v14 = vld [vmem:[#allocation2 + $0xc0] sm:$0xff]  ;;  %vm164_vm6 = vcmask 195584   ;;  %vm212_vm7 = vcmask 261120   ;;  %s873_s20 = smov 48  }
  0x1a   :  { %140 = vrot.lane.b32.xlu1 %v138_v6, %s867_s0  ;;  %127 = vrot.lane.b32.xlu2 %v120_v7, %s861_s17  ;;  %v191_v15 = vld [vmem:[#allocation2 + $0xc8] sm:$0xff]  ;;  %s869_s17 = smov 24   ;;  %v188_v23 = vld [vmem:[#allocation2 + $0xb0] sm:$0xff]  ;;  %v189_v24 = vld [vmem:[#allocation2 + $0xb8] sm:$0xff]  ;;  %vm320_vm8 = vcmask 916480   ;;  %vm409_vm9 = vcmask 392192  }
  0x1b   :  { %217 = vmatpush.msra.mxu0 %v194_v10  ;;  %257 = vmatpush.msra.mxu2 %v195_v11  ;;  %v186_v25 = vld [vmem:[#allocation2 + $0xa0] sm:$0xff]  ;;  %v187_v26 = vld [vmem:[#allocation2 + $0xa8] sm:$0xff]  ;;  %v184_v27 = vld [vmem:[#allocation2 + $0x90] sm:$0xff]  ;;  %vm610_vm10 = vcmask 523264   ;;  %s874_s2 = smov [#allocation10]  }
  0x1c   :  { %v113_v1 = vld [vmem:[%s1311_s14] sm:$0xff]  ;;  %v185_v28 = vld [vmem:[#allocation2 + $0x98] sm:$0xff]  ;;  %v183_v30 = vld [vmem:[#allocation2 + $0x88] sm:$0xff] }
  0x1d   :  { %vm114_vm2 = vcmp.eq.s32.totalorder %v113_v1, 0  ;;  %218 = vmatpush.msra.mxu0 %v192_v12  ;;  %258 = vmatpush.msra.mxu2 %v193_v13  ;;  %v182_v29 = vld [vmem:[#allocation2 + $0x80] sm:$0xff]  ;;  %v180_v31 = vld [vmem:[#allocation2 + $0x70] sm:$0xff]  ;;  %v181_v32 = vld [vmem:[#allocation2 + $0x78] sm:$0xff] }
  0x1e   :  { %v121_v5 = vsel %vm114_vm2, 1, %v866_v0  ;;  %v178_v33 = vld [vmem:[#allocation2 + $0x60] sm:$0xff]  ;;  %v179_v34 = vld [vmem:[#allocation2 + $0x68] sm:$0xff]  ;;  %v176_v35 = vld [vmem:[#allocation2 + $0x50] sm:$0xff] }
  0x1f   :  { %123 = vperm.xlu0 %718, %v121_v5   ;;  %219 = vmatpush.msra.mxu0 %v190_v14  ;;  %v177_v36 = vld [vmem:[#allocation2 + $0x58] sm:$0xff]  ;;  %v174_v37 = vld [vmem:[#allocation2 + $0x40] sm:$0xff]  ;;  %v175_v38 = vld [vmem:[#allocation2 + $0x48] sm:$0xff] }
  0x20   :  { %259 = vmatpush.msra.mxu2 %v191_v15  ;;  %v172_v39 = vld [vmem:[#allocation2 + $0x30] sm:$0xff]  ;;  %v173_v40 = vld [vmem:[#allocation2 + $0x38] sm:$0xff]  ;;  %v170_v41 = vld [vmem:[#allocation2 + $0x20] sm:$0xff] }
  0x21   :  { %220 = vmatpush.msra.mxu0 %v188_v23  ;;  %v204_v42 = vld [vmem:[#allocation2 + $0x130] sm:$0xff]  ;;  %v171_v43 = vld [vmem:[#allocation2 + $0x28] sm:$0xff]  ;;  %v205_v44 = vld [vmem:[#allocation2 + $0x138] sm:$0xff] }
  0x22   :  { %144 = vrot.lane.b32.xlu1 %v138_v6, %s868_s1  ;;  %260 = vmatpush.msra.mxu2 %v189_v24  ;;  %v168_v45 = vld [vmem:[#allocation2 + $0x10] sm:$0xff]  ;;  %v202_v46 = vld [vmem:[#allocation2 + $0x120] sm:$0xff]  ;;  %v169_v47 = vld [vmem:[#allocation2 + $0x18] sm:$0xff] }
  0x23   :  { %221 = vmatpush.msra.mxu0 %v186_v25  ;;  %248 = vmatpush.msra.mxu1 %v204_v42  ;;  %v203_v48 = vld [vmem:[#allocation2 + $0x128] sm:$0xff]  ;;  %v166_v49 = vld [vmem:[#allocation2] sm:$0xff]  ;;  %v200_v50 = vld [vmem:[#allocation2 + $0x110] sm:$0xff] }
  0x24   :  { %261 = vmatpush.msra.mxu2 %v187_v26  ;;  %288 = vmatpush.msra.mxu3 %v205_v44  ;;  %v167_v51 = vld [vmem:[#allocation2 + $0x8] sm:$0xff]  ;;  %v201_v52 = vld [vmem:[#allocation2 + $0x118] sm:$0xff]  ;;  %v198_v53 = vld [vmem:[#allocation2 + $0x100] sm:$0xff] }
  0x25   :  { %222 = vmatpush.msra.mxu0 %v184_v27  ;;  %249 = vmatpush.msra.mxu1 %v202_v46  ;;  %v199_v54 = vld [vmem:[#allocation2 + $0x108] sm:$0xff]  ;;  %v382_v63 = vld [vmem:[%s1299_s6 + $0x78] sm:$0xff]  ;;  %v381_v0 = vld [vmem:[%s1299_s6 + $0x70] sm:$0xff] }
  0x26   :  { %262 = vmatpush.msra.mxu2 %v185_v28  ;;  %289 = vmatpush.msra.mxu3 %v203_v48  ;;  %v380_v1 = vld [vmem:[%s1299_s6 + $0x68] sm:$0xff]  ;;  %v378_v3 = vld [vmem:[%s1299_s6 + $0x58] sm:$0xff]  ;;  %v206_v4 = vld [vmem:[%s1296_s3] sm:$0x3] }
  0x27   :  { %131 = vrot.lane.b32.xlu0 %v120_v7, %s865_s27  ;;  %223 = vmatpush.msra.mxu0 %v182_v29  ;;  %v208_v5 = vperm.slane %v206_v4, 0  ;;  %v298_v8 = vld [vmem:[%s1297_s4] sm:$0x3]  ;;  %v209_v9 = vperm.slane %v206_v4, 1  ;;  %v377_v28 = vld [vmem:[%s1299_s6 + $0x50] sm:$0xff]  ;;  %v376_v29 = vld [vmem:[%s1299_s6 + $0x48] sm:$0xff] }
  0x28   :  { %263 = vmatpush.msra.mxu2 %v183_v30  ;;  %250 = vmatpush.msra.mxu1 %v200_v50  ;;  %v306_v12 = vld [vmem:[%s1298_s5] sm:$0x3]  ;;  %v300_v14 = vperm.slane %v298_v8, 0  ;;  %s871_s4 = smov 64   ;;  %s872_s5 = smov 96   ;;  %v398_v50 = vld [vmem:[%s1299_s6 + $0xf8] sm:$0xff] }
  0x29   :  { %224 = vmatpush.msra.mxu0 %v180_v31  ;;  %290 = vmatpush.msra.mxu3 %v201_v52  ;;  %v309_v25 = vperm.slane %v306_v12, 1  ;;  %v375_v30 = vld [vmem:[%s1299_s6 + $0x40] sm:$0xff]  ;;  %v374_v31 = vld [vmem:[%s1299_s6 + $0x38] sm:$0xff]  ;;  %v396_v52 = vld [vmem:[%s1299_s6 + $0xe8] sm:$0xff] }
  0x2a   :  { %264 = vmatpush.msra.mxu2 %v181_v32  ;;  %251 = vmatpush.msra.mxu1 %v198_v53  ;;  %v373_v32 = vld [vmem:[%s1299_s6 + $0x30] sm:$0xff]  ;;  %v384_v4 = vld [vmem:[%s1299_s6 + $0x88] sm:$0xff] }
  0x2b   :  { %225 = vmatpush.msra.mxu0 %v178_v33  ;;  %291 = vmatpush.msra.mxu3 %v199_v54  ;;  %v372_v33 = vld [vmem:[%s1299_s6 + $0x28] sm:$0xff]  ;;  %v395_v54 = vld [vmem:[%s1299_s6 + $0xe0] sm:$0xff] }
  0x2c   :  { %265 = vmatpush.msra.mxu2 %v179_v34  ;;  %413 = vmatpush.msrb.mxu1 %v382_v63  ;;  %v371_v34 = vld [vmem:[%s1299_s6 + $0x20] sm:$0xff] }
  0x2d   :  { %226 = vmatpush.msra.mxu0 %v176_v35  ;;  %v370_v35 = vld [vmem:[%s1299_s6 + $0x18] sm:$0xff]  ;;  %433 = vmatpush.msrb.mxu3 %v398_v50  ;;  %v387_v63 = vld [vmem:[%s1299_s6 + $0xa0] sm:$0xff]  ;;  %v539_v50 = vld [vmem:[%s1303_s10 + $0x50] sm:$0xff] }
  0x2e   :  { %266 = vmatpush.msra.mxu2 %v177_v36  ;;  %414 = vmatpush.msrb.mxu1 %v381_v0  ;;  %v369_v36 = vld [vmem:[%s1299_s6 + $0x10] sm:$0xff]  ;;  %v386_v0 = vld [vmem:[%s1299_s6 + $0x98] sm:$0xff] }
  0x2f   :  { %227 = vmatpush.msra.mxu0 %v174_v37  ;;  %v368_v37 = vld [vmem:[%s1299_s6 + $0x8] sm:$0xff] }
  0x30   :  { %267 = vmatpush.msra.mxu2 %v175_v38  ;;  %415 = vmatpush.msrb.mxu1 %v380_v1  ;;  %v367_v38 = vld [vmem:[%s1299_s6] sm:$0xff] }
  0x31   :  { %228 = vmatpush.msra.mxu0 %v172_v39 }
  0x32   :  { %268 = vmatpush.msra.mxu2 %v173_v40 }
  0x33   :  { %229 = vmatpush.msra.mxu0 %v170_v41 }
  0x34   :  { %269 = vmatpush.msra.mxu2 %v171_v43 }
  0x35   :  { %230 = vmatpush.msra.mxu0 %v168_v45 }
  0x36   :  { %270 = vmatpush.msra.mxu2 %v169_v47 }
  0x37   :  { %231 = vmatpush.msra.mxu0 %v166_v49 }
  0x38   :  { %271 = vmatpush.msra.mxu2 %v167_v51  ;;  %232 = vmatmul.f32.vlgmr.msra.gmra.mxu0 %v980_v2  ;;  %v397_v51 = vld [vmem:[%s1299_s6 + $0xf0] sm:$0xff] }
  0x39   :  { %272 = vmatmul.f32.vlgmr.msra.gmra.mxu2 %v980_v2  ;;  %434 = vmatpush.msrb.mxu3 %v397_v51  ;;  %v538_v51 = vld [vmem:[%s1303_s10 + $0x48] sm:$0xff] }
  0x3b   :  { %435 = vmatpush.msrb.mxu3 %v396_v52  ;;  %v550_v52 = vld [vmem:[%s1303_s10 + $0xa8] sm:$0xff] }
  0x3d   :  { %436 = vmatpush.msrb.mxu3 %v395_v54  ;;  %v536_v54 = vld [vmem:[%s1303_s10 + $0x38] sm:$0xff] }
  0x74   :  { %v128_v55 = vpop.permute.xlu2 %127 }
  0x8c   :  { %v141_v17 = vpop.permute.xlu1 %140 }
  0x91   :  { %v991_v16 = vpop.permute.xlu0 %123 }
  0x92   :  { %vm125_vm3 = vcmp.eq.s32.totalorder %v991_v16, 1  ;;  %v724_v16 = vld [vmem:[%s1306_s13] ss:$0 sm:$0xff] }
  0x93   :  { %v143_v18 = vsel %vm125_vm3, %v980_v2, %v141_v17  ;;  %v130_v58 = vsel %vm125_vm3, %v980_v2, %v128_v55 }
  0x94   :  { %153 = vrot.lane.b32.xlu0 %v143_v18, %s869_s17  ;;  %v145_v20 = vpop.permute.xlu1 %144  ;;  %v308_v18 = vperm.slane %v306_v12, 0 }
  0x95   :  { %v147_v22 = vsel %vm125_vm3, %v980_v2, %v145_v20 }
  0x96   :  { %157 = vrot.lane.b32.xlu1 %v147_v22, %s870_s18  ;;  %v301_v22 = vperm.slane %v298_v8, 1  ;;  %v402_v8 = vld [vmem:[%s1299_s6 + $0x118] sm:$0xff] }
  0x99   :  { %v132_v19 = vpop.permute.xlu0 %131 }
  0x9a   :  { %v134_v21 = vsel %vm125_vm3, %v980_v2, %v132_v19  ;;  %v379_v2 = vld [vmem:[%s1299_s6 + $0x60] sm:$0xff] }
  0x9b   :  { %149 = vrot.lane.b32.xlu2 %v134_v21, %s865_s27  ;;  %416 = vmatpush.msrb.mxu1 %v379_v2 }
  0x9d   :  { %417 = vmatpush.msrb.mxu1 %v378_v3  ;;  %v385_v3 = vld [vmem:[%s1299_s6 + $0x90] sm:$0xff] }
  0x9f   :  { %418 = vmatpush.msrb.mxu1 %v377_v28  ;;  %v720_v28 = vld [vmem:[%s1301_s8] ss:$0 sm:$0xff] }
  0xa1   :  { %419 = vmatpush.msrb.mxu1 %v376_v29 }
  0xa3   :  { %420 = vmatpush.msrb.mxu1 %v375_v30  ;;  %v721_v30 = vld [vmem:[%s1302_s9] ss:$0 sm:$0xff] }
  0xa5   :  { %421 = vmatpush.msrb.mxu1 %v374_v31 }
  0xa7   :  { %422 = vmatpush.msrb.mxu1 %v373_v32 }
  0xa9   :  { %423 = vmatpush.msrb.mxu1 %v372_v33 }
  0xab   :  { %424 = vmatpush.msrb.mxu1 %v371_v34 }
  0xad   :  { %425 = vmatpush.msrb.mxu1 %v370_v35 }
  0xaf   :  { %426 = vmatpush.msrb.mxu1 %v369_v36 }
  0xb1   :  { %427 = vmatpush.msrb.mxu1 %v368_v37 }
  0xb3   :  { %428 = vmatpush.msrb.mxu1 %v367_v38 }
  0xb5   :  { %v233_v6 = vpop.f32.mrf.mxu0 }
  0xb6   :  { %v234_v7 = vadd.f32 %v233_v6, %v208_v5  ;;  %v383_v5 = vld [vmem:[%s1299_s6 + $0x80] sm:$0xff]  ;;  %v404_v6 = vld [vmem:[%s1299_s6 + $0x128] sm:$0xff] }
  0xb7   :  { %463 = vmatpush.msrb.mxu0 %v404_v6 }
  0xbc   :  { %v273_v11 = vpop.f32.mrf.mxu2 }
  0xbd   :  { %v274_v17 = vadd.f32 %v273_v11, %v209_v9  ;;  %v401_v9 = vld [vmem:[%s1299_s6 + $0x110] sm:$0xff]  ;;  %v399_v11 = vld [vmem:[%s1299_s6 + $0x100] sm:$0xff] }
  0xf5   :  { %v150_v56 = vpop.permute.xlu2 %149 }
  0xf6   :  { %v161_v59 = vsel %vm160_vm4, %v130_v58, %v150_v56  ;;  %v394_v56 = vld [vmem:[%s1299_s6 + $0xd8] sm:$0xff]  ;;  %v392_v58 = vld [vmem:[%s1299_s6 + $0xc8] sm:$0xff] }
  0xf7   :  { %437 = vmatpush.msrb.mxu3 %v394_v56  ;;  %v534_v56 = vld [vmem:[%s1303_s10 + $0x28] sm:$0xff] }
 0x106   :  { %v154_v57 = vpop.permute.xlu0 %153 }
 0x107   :  { %v163_v60 = vsel %vm162_vm5, %v161_v59, %v154_v57  ;;  %v393_v57 = vld [vmem:[%s1299_s6 + $0xd0] sm:$0xff]  ;;  %v391_v59 = vld [vmem:[%s1299_s6 + $0xc0] sm:$0xff] }
 0x108   :  { %v158_v61 = vpop.permute.xlu1 %157  ;;  %438 = vmatpush.msrb.mxu3 %v393_v57  ;;  %v533_v57 = vld [vmem:[%s1303_s10 + $0x20] sm:$0xff] }
 0x109   :  { %v165_v62 = vsel %vm164_vm6, %v163_v60, %v158_v61  ;;  %v390_v60 = vld [vmem:[%s1299_s6 + $0xb8] sm:$0xff]  ;;  %v389_v61 = vld [vmem:[%s1299_s6 + $0xb0] sm:$0xff] }
 0x10a   :  { %696 = vmatmul.msk.f32.vlgmr.msra.gmra.mxu1 %vm212_vm7, %v165_v62  ;;  %697 = vmatmul.msk.f32.vlgmr.msra.gmra.mxu3 %vm212_vm7, %v165_v62  ;;  %v388_v62 = vld [vmem:[%s1299_s6 + $0xa8] sm:$0xff] }
 0x10b   :  { %439 = vmatpush.msrb.mxu3 %v392_v58  ;;  %588 = vmatpush.msra.mxu1 %v550_v52  ;;  %v532_v58 = vld [vmem:[%s1303_s10 + $0x18] sm:$0xff] }
 0x10d   :  { %440 = vmatpush.msrb.mxu3 %v391_v59  ;;  %v531_v59 = vld [vmem:[%s1303_s10 + $0x10] sm:$0xff] }
 0x10f   :  { %441 = vmatpush.msrb.mxu3 %v390_v60  ;;  %v530_v60 = vld [vmem:[%s1303_s10 + $0x8] sm:$0xff] }
 0x111   :  { %442 = vmatpush.msrb.mxu3 %v389_v61  ;;  %v529_v61 = vld [vmem:[%s1303_s10] sm:$0xff] }
 0x113   :  { %443 = vmatpush.msrb.mxu3 %v388_v62  ;;  %v549_v62 = vld [vmem:[%s1303_s10 + $0xa0] sm:$0xff] }
 0x114   :  { %589 = vmatpush.msra.mxu1 %v549_v62 }
 0x115   :  { %444 = vmatpush.msrb.mxu3 %v387_v63  ;;  %v548_v63 = vld [vmem:[%s1303_s10 + $0x98] sm:$0xff] }
 0x116   :  { %590 = vmatpush.msra.mxu1 %v548_v63 }
 0x117   :  { %445 = vmatpush.msrb.mxu3 %v386_v0  ;;  %v547_v0 = vld [vmem:[%s1303_s10 + $0x90] sm:$0xff] }
 0x118   :  { %591 = vmatpush.msra.mxu1 %v547_v0 }
 0x119   :  { %446 = vmatpush.msrb.mxu3 %v385_v3 }
 0x11b   :  { %447 = vmatpush.msrb.mxu3 %v384_v4 }
 0x11d   :  { %448 = vmatpush.msrb.mxu3 %v383_v5 }
 0x187   :  { %v253_v10 = vpop.f32.mrf.mxu1 }
 0x188   :  { %v254_v13 = vadd.f32 %v253_v10, %v234_v7  ;;  %v403_v7 = vld [vmem:[%s1299_s6 + $0x120] sm:$0xff]  ;;  %v400_v10 = vld [vmem:[%s1299_s6 + $0x108] sm:$0xff]  ;;  %s682_s6 = sshll.u32 %s874_s2, 4  ;;  %s683_s6 = int_to_ptr.vmem [resolvable:$true] %s682_s6 }
 0x189   :  { %464 = vmatpush.msrb.mxu0 %v403_v7 }
 0x18a   :  { %v296_v15 = vmax.f32 %v254_v13, 0.0 }
 0x18b   :  { %465 = vmatpush.msrb.mxu0 %v402_v8 }
 0x18c   :  { %v304_v19 = vmul.f32 %v300_v14, %v296_v15 }
 0x18d   :  { %v293_v20 = vpop.f32.mrf.mxu3  ;;  %466 = vmatpush.msrb.mxu0 %v401_v9 }
 0x18e   :  { %v294_v21 = vadd.f32 %v293_v20, %v274_v17  ;;  %v312_v23 = vadd.f32 %v308_v18, %v304_v19 }
 0x18f   :  { %467 = vmatpush.msrb.mxu0 %v400_v10 }
 0x190   :  { %v297_v24 = vmax.f32 %v294_v21, 0.0  ;;  %316 = vrot.lane.b32.xlu0 %v312_v23, %s868_s1  ;;  %v719_v21 = vld [vmem:[#allocation5] ss:$0 sm:$0xff] }
 0x191   :  { %468 = vmatpush.msrb.mxu0 %v399_v11  ;;  %v722_v11 = vld [vmem:[#allocation7] ss:$0 sm:$0xff] }
 0x192   :  { %v305_v26 = vmul.f32 %v301_v22, %v297_v24 }
 0x194   :  { %v313_v27 = vadd.f32 %v309_v25, %v305_v26 }
 0x196   :  { %318 = vrot.lane.b32.xlu2 %v313_v27, %s868_s1 }
 0x1f0   :  { %v319_v39 = vpop.permute.xlu2 %318 }
 0x1f1   :  { %v1072_v40 = vmax.f32 %v313_v27, %v319_v39 }
 0x1f3   :  { %v327_v41 = vrot.slane %v1072_v40, 7 }
 0x1f5   :  { %v329_v42 = vsel %vm119_vm1, %v1072_v40, %v327_v41  ;;  %v542_v41 = vld [vmem:[%s1303_s10 + $0x68] sm:$0xff] }
 0x1f6   :  { %331 = vrot.lane.b32.xlu1 %v329_v42, %s871_s4 }
 0x202   :  { %v317_v43 = vpop.permute.xlu0 %316 }
 0x203   :  { %v321_v44 = vsel %vm320_vm8, %v317_v43, %v319_v39  ;;  %v544_v39 = vld [vmem:[%s1303_s10 + $0x78] sm:$0xff] }
 0x204   :  { %v1079_v45 = vmax.f32 %v312_v23, %v321_v44  ;;  %558 = vmatpush.msrb.mxu2 %v544_v39 }
 0x206   :  { %429 = vmatmul.f32.vlgmr.msrb.gmra.mxu1 %v1079_v45  ;;  %v340_v46 = vrot.slane %v1079_v45, 1 }
 0x208   :  { %v342_v47 = vsel %vm137_vm0, %v340_v46, %v1079_v45 }
 0x209   :  { %348 = vrot.lane.b32.xlu0 %v342_v47, %s871_s4  ;;  %344 = vrot.lane.b32.xlu2 %v342_v47, %s872_s5 }
 0x211   :  { %335 = vrot.lane.b32.xlu2 %v329_v42, %s870_s18 }
 0x263   :  { %v345_v48 = vpop.permute.xlu2 %344 }
 0x264   :  { %v347_v49 = vsel %vm125_vm3, %v1072_v40, %v345_v48  ;;  %v541_v48 = vld [vmem:[%s1303_s10 + $0x60] sm:$0xff] }
 0x265   :  { %357 = vrot.lane.b32.xlu0 %v347_v49, %s873_s20  ;;  %v540_v49 = vld [vmem:[%s1303_s10 + $0x58] sm:$0xff] }
 0x268   :  { %v332_v53 = vpop.permute.xlu1 %331 }
 0x269   :  { %v334_v55 = vsel %vm125_vm3, %v1079_v45, %v332_v53  ;;  %v537_v53 = vld [vmem:[%s1303_s10 + $0x40] sm:$0xff] }
 0x26a   :  { %353 = vrot.lane.b32.xlu1 %v334_v55, %s868_s1  ;;  %v535_v55 = vld [vmem:[%s1303_s10 + $0x30] sm:$0xff] }
 0x26b   :  { %v336_v14 = vpop.permute.xlu2 %335 }
 0x26c   :  { %v338_v17 = vsel %vm125_vm3, %v1079_v45, %v336_v14 }
 0x27b   :  { %v349_v1 = vpop.permute.xlu0 %348 }
 0x27c   :  { %v351_v2 = vsel %vm125_vm3, %v1072_v40, %v349_v1  ;;  %v546_v1 = vld [vmem:[%s1303_s10 + $0x88] sm:$0xff] }
 0x27d   :  { %361 = vrot.lane.b32.xlu1 %v351_v2, %s871_s4  ;;  %592 = vmatpush.msra.mxu1 %v546_v1  ;;  %v545_v2 = vld [vmem:[%s1303_s10 + $0x80] sm:$0xff] }
 0x27f   :  { %593 = vmatpush.msra.mxu1 %v545_v2 }
 0x283   :  { %v430_v22 = vpop.f32.mrf.mxu1 }
 0x284   :  { %v431_v24 = vadd.f32 %v719_v21, %v430_v22 }
 0x2d7   :  { %v358_v15 = vpop.permute.xlu0 %357 }
 0x2d8   :  { %v365_v18 = vsel %vm162_vm5, %v338_v17, %v358_v15  ;;  %v723_v17 = vld [vmem:[%s1305_s12] ss:$0 sm:$0xff] }
 0x2dc   :  { %v354_v12 = vpop.permute.xlu1 %353 }
 0x2dd   :  { %v364_v13 = vsel %vm320_vm8, %v1072_v40, %v354_v12  ;;  %v543_v40 = vld [vmem:[%s1303_s10 + $0x70] sm:$0xff] }
 0x2de   :  { %449 = vmatmul.f32.vlgmr.msrb.gmra.mxu3 %v364_v13  ;;  %559 = vmatpush.msrb.mxu2 %v543_v40 }
 0x2e0   :  { %560 = vmatpush.msrb.mxu2 %v542_v41  ;;  %v725_v41 = vld [vmem:[%s1308_s15] ss:$0 sm:$0xff]  ;;  %s684_s15 = sshll.u32 %s1309_s16, 4  ;;  %s685_s15 = int_to_ptr.hbm [resolvable:$true] %s684_s15 }
 0x2e2   :  { %561 = vmatpush.msrb.mxu2 %v541_v48 }
 0x2e4   :  { %562 = vmatpush.msrb.mxu2 %v540_v49 }
 0x2e6   :  { %563 = vmatpush.msrb.mxu2 %v539_v50 }
 0x2e8   :  { %564 = vmatpush.msrb.mxu2 %v538_v51 }
 0x2ea   :  { %565 = vmatpush.msrb.mxu2 %v537_v53 }
 0x2ec   :  { %566 = vmatpush.msrb.mxu2 %v536_v54 }
 0x2ee   :  { %567 = vmatpush.msrb.mxu2 %v535_v55 }
 0x2ef   :  { %v362_v19 = vpop.permute.xlu1 %361 }
 0x2f0   :  { %v366_v20 = vsel %vm212_vm7, %v365_v18, %v362_v19  ;;  %568 = vmatpush.msrb.mxu2 %v534_v56 }
 0x2f1   :  { %698 = vmatmul.msk.f32.vlgmr.msrb.gmra.mxu0 %vm409_vm9, %v366_v20 }
 0x2f2   :  { %569 = vmatpush.msrb.mxu2 %v533_v57 }
 0x2f4   :  { %570 = vmatpush.msrb.mxu2 %v532_v58 }
 0x2f6   :  { %571 = vmatpush.msrb.mxu2 %v531_v59 }
 0x2f8   :  { %572 = vmatpush.msrb.mxu2 %v530_v60 }
 0x2fa   :  { %573 = vmatpush.msrb.mxu2 %v529_v61 }
 0x361   :  { %v450_v23 = vpop.f32.mrf.mxu3 }
 0x362   :  { %v451_v25 = vadd.f32 %v450_v23, %v431_v24  ;;  %v633_v23 = vld [vmem:[#allocation8 + $0x38] sm:$0xff]  ;;  %v632_v24 = vld [vmem:[#allocation8 + $0x30] sm:$0xff] }
 0x363   :  { %649 = vmatpush.msra.mxu3 %v633_v23 }
 0x365   :  { %650 = vmatpush.msra.mxu3 %v632_v24 }
 0x36e   :  { %v470_v26 = vpop.f32.mrf.mxu0 }
 0x36f   :  { %v471_v27 = vadd.f32 %v470_v26, %v451_v25  ;;  %v631_v25 = vld [vmem:[#allocation8 + $0x28] sm:$0xff]  ;;  %v630_v26 = vld [vmem:[#allocation8 + $0x20] sm:$0xff] }
 0x370   :  { %651 = vmatpush.msra.mxu3 %v631_v25 }
 0x371   :  { %v473_v29 = vmax.f32 %v471_v27, 0.0  ;;  %v629_v27 = vld [vmem:[#allocation8 + $0x18] sm:$0xff] }
 0x372   :  { %652 = vmatpush.msra.mxu3 %v630_v26 }
 0x373   :  { %v478_v31 = vmul.f32 %v720_v28, %v473_v29  ;;  %v628_v28 = vld [vmem:[#allocation8 + $0x10] sm:$0xff]  ;;  %v627_v29 = vld [vmem:[#allocation8 + $0x8] sm:$0xff] }
 0x374   :  { %653 = vmatpush.msra.mxu3 %v629_v27 }
 0x375   :  { %v483_v32 = vadd.f32 %v721_v30, %v478_v31  ;;  %v626_v30 = vld [vmem:[#allocation8] sm:$0xff] }
 0x376   :  { %654 = vmatpush.msra.mxu3 %v628_v28 }
 0x377   :  { %485 = vrot.lane.b32.xlu2 %v483_v32, %s868_s1 }
 0x378   :  { %655 = vmatpush.msra.mxu3 %v627_v29 }
 0x37a   :  { %656 = vmatpush.msra.mxu3 %v626_v30 }
 0x3d1   :  { %v486_v33 = vpop.permute.xlu2 %485 }
 0x3d2   :  { %v1181_v34 = vmax.f32 %v483_v32, %v486_v33 }
 0x3d4   :  { %v502_v35 = vrot.slane %v1181_v34, 1  ;;  %v490_v36 = vrot.slane %v1181_v34, 7 }
 0x3d6   :  { %v504_v37 = vsel %vm137_vm0, %v502_v35, %v1181_v34  ;;  %v492_v38 = vsel %vm119_vm1, %v1181_v34, %v490_v36 }
 0x3d7   :  { %510 = vrot.lane.b32.xlu2 %v504_v37, %s871_s4  ;;  %506 = vrot.lane.b32.xlu1 %v504_v37, %s872_s5 }
 0x3d8   :  { %494 = vrot.lane.b32.xlu0 %v492_v38, %s871_s4 }
 0x3df   :  { %498 = vrot.lane.b32.xlu1 %v492_v38, %s870_s18 }
 0x431   :  { %v511_v46 = vpop.permute.xlu2 %510 }
 0x432   :  { %v513_v47 = vsel %vm125_vm3, %v1181_v34, %v511_v46 }
 0x449   :  { %v507_v42 = vpop.permute.xlu1 %506 }
 0x44a   :  { %v495_v43 = vpop.permute.xlu0 %494  ;;  %v509_v44 = vsel %vm125_vm3, %v1181_v34, %v507_v42 }
 0x44b   :  { %519 = vrot.lane.b32.xlu2 %v509_v44, %s873_s20  ;;  %v497_v45 = vsel %vm125_vm3, %v1181_v34, %v495_v43 }
 0x44c   :  { %515 = vrot.lane.b32.xlu0 %v497_v45, %s868_s1 }
 0x451   :  { %v499_v5 = vpop.permute.xlu1 %498 }
 0x452   :  { %v501_v7 = vsel %vm125_vm3, %v1181_v34, %v499_v5 }
 0x454   :  { %523 = vrot.lane.b32.xlu0 %v513_v47, %s871_s4 }
 0x4a5   :  { %v520_v6 = vpop.permute.xlu2 %519 }
 0x4a6   :  { %v527_v8 = vsel %vm162_vm5, %v501_v7, %v520_v6 }
 0x4be   :  { %v516_v3 = vpop.permute.xlu0 %515 }
 0x4bf   :  { %v526_v4 = vsel %vm320_vm8, %v1181_v34, %v516_v3 }
 0x4c0   :  { %574 = vmatmul.f32.vlgmr.msrb.gmra.mxu2 %v526_v4 }
 0x4c6   :  { %v524_v9 = vpop.permute.xlu0 %523 }
 0x4c7   :  { %v528_v10 = vsel %vm212_vm7, %v527_v8, %v524_v9 }
 0x4c8   :  { %699 = vmatmul.msk.f32.vlgmr.msra.gmra.mxu1 %vm409_vm9, %v528_v10 }
 0x543   :  { %v575_v12 = vpop.f32.mrf.mxu2 }
 0x544   :  { %v576_v13 = vadd.f32 %v722_v11, %v575_v12 }
 0x545   :  { %v595_v14 = vpop.f32.mrf.mxu1 }
 0x546   :  { %v596_v15 = vadd.f32 %v595_v14, %v576_v13 }
 0x548   :  { %v598_v18 = vmax.f32 %v596_v15, 0.0 }
 0x54a   :  { %v603_v19 = vmul.f32 %v723_v17, %v598_v18 }
 0x54c   :  { %v608_v20 = vadd.f32 %v724_v16, %v603_v19 }
 0x54e   :  { %v609_v21 = vmul.f32 %v608_v20, %v608_v20 }
 0x550   :  { %v611_v22 = vsel %vm610_vm10, %v609_v21, 0.0 }
 0x551   :  { %612 = vadd.xlane.f32.xlu1 %v611_v22 }
 0x5c4   :  { %v613_v31 = vpop.xlane.xlu1 %612 }
 0x5c5   :  { %v614_v32 = vmax.f32 %v613_v31, 1e-24 }
 0x5c7   :  { %726 = vrsqrt.f32 %v614_v32  ;;  %vm621_vm12 = vweird.f32 %v614_v32 }
 0x5cd   :  { %v727_v33 = vpop.eup %726 }
 0x5ce   :  { %v616_v34 = vmul.f32 %v727_v33, %v614_v32  ;;  %vm622_vm11 = vweird.f32 %v727_v33 }
 0x5cf   :  { %vm623_vm13 = vmor %vm621_vm12, %vm622_vm11 }
 0x5d0   :  { %v617_v35 = vmul.f32 %v727_v33, %v616_v34 }
 0x5d2   :  { %v618_v36 = vmul.f32 0.5, %v617_v35 }
 0x5d4   :  { %v619_v37 = vsub.f32 1.5, %v618_v36 }
 0x5d6   :  { %v620_v38 = vmul.f32 %v727_v33, %v619_v37 }
 0x5d8   :  { %v624_v39 = vsel %vm623_vm13, %v727_v33, %v620_v38 }
 0x5d9   :  { %v625_v40 = vmul.f32 %v624_v39, %v608_v20 }
 0x5db   :  { %700 = vmatmul.msk.f32.vlgmr.msra.gmra.mxu3 %vm610_vm10, %v625_v40 }
 0x65e   :  { %v658_v42 = vpop.f32.mrf.mxu3 }
 0x65f   :  { %v659_v43 = vadd.f32 %v725_v41, %v658_v42 }
 0x661   :  { %v661_v44 = vmul.f32 %v659_v43, %v659_v43 }
 0x663   :  { %662 = vadd.xlane.f32.xlu2 %v661_v44 }
 0x6d6   :  { %v663_v45 = vpop.xlane.xlu2 %662 }
 0x6d7   :  { %v664_v46 = vmax.f32 %v663_v45, 1e-24 }
 0x6d9   :  { %728 = vrsqrt.f32 %v664_v46  ;;  %vm671_vm15 = vweird.f32 %v664_v46 }
 0x6df   :  { %v729_v47 = vpop.eup %728 }
 0x6e0   :  { %v666_v48 = vmul.f32 %v729_v47, %v664_v46  ;;  %vm672_vm14 = vweird.f32 %v729_v47 }
 0x6e1   :  { %vm673_vm0 = vmor %vm671_vm15, %vm672_vm14 }
 0x6e2   :  { %v667_v49 = vmul.f32 %v729_v47, %v666_v48 }
 0x6e4   :  { %v668_v50 = vmul.f32 0.5, %v667_v49 }
 0x6e6   :  { %v669_v51 = vsub.f32 1.5, %v668_v50 }
 0x6e8   :  { %v670_v52 = vmul.f32 %v729_v47, %v669_v51 }
 0x6ea   :  { %v674_v53 = vsel %vm673_vm0, %v729_v47, %v670_v52 }
 0x6eb   :  { %v675_v54 = vmul.f32 %v674_v53, %v659_v43 }
 0x6ed   :  { %676 = vst [vmem:[#allocation10] sm:$0xff] %v675_v54 }
 0x6ee   :  { %687 = dma.vmem_to_hbm [thread:$0]  %s683_s6, 128, %s685_s15, [#allocation4]  }
 0x6ef   :  { %856 = dma.done.wait [#allocation4], 128  }
 0x6f0   :  { %857 = vsyncadd [#allocation4], 4294967168 }
 0x6f1   :  { %692 = vsyncpa [#allocation3], 1 }
 0x6f2   :  { %693 = vsyncpa [#allocation6], 1 }
 0x6f3   :  { %694 = vsyncpa [#allocation9], 1 }
 0x6f4   :  { %695 = vsyncpa [#allocation4], 1 }

</bundles_post_ra>
